<compile_context>
chip_gen: v5e
topology: v5e:2x2
jax: 0.10.0
libtpu: 0.0.40
codegen_flags: <defaults>
</compile_context>

<pallas_src>
import functools

import jax
import jax.numpy as jnp
from jax.experimental import pallas as pl
from jax.experimental.pallas import tpu as pltpu

H1 = 32           # first hidden width
H2 = 16           # second hidden width (zero-padded up to H1 lanes in the slab)
NUM_HEADS = 3     # position, confidence, predicted_return
LANES = 128       # vreg lane width; the packed slab is lane-dense across 128 lanes

# Lane offsets of the parameter blocks inside the packed [rows, 128] slab.
_L_W1 = 0         # W1            : lanes   0..31, rows 0..input_dim-1
_L_W2 = 32        # W2 (padded)   : lanes  32..63, rows 0..31 (cols 16.. are zero)
_L_WH = 64        # heads (padded): lanes  64..95, rows 0..16 (cols 3.. are zero)
_L_B = 96         # biases        : lanes  96..127
_R_B1 = 0         # b1 row (8-aligned sublane)
_R_B2 = 8         # b2 row (8-aligned sublane)
_ONE_LANE = H2    # h2 lane 16 carries an exact constant 1.0 -> folds head biases

_LARGE_B_TILE = 512   # batch tile for the gridded large-B path (mem-bound sweet spot)


def _slab_rows(input_dim: int) -> int:
    return max(((input_dim + 7) // 8) * 8, H1)


def _financial_kernel(x_ref, p_ref, out_ref, *, input_dim):
    x = x_ref[...]                                        # [TB, input_dim]
    w1 = p_ref[0:input_dim, _L_W1:_L_W1 + H1]             # [input_dim, 32]
    w2 = p_ref[0:H1, _L_W2:_L_W2 + H1]                    # [32, 32] (cols 16: zero)
    wh = p_ref[0:H1, _L_WH:_L_WH + H1]                    # [32, 32] (biases in row 16)
    b1 = p_ref[_R_B1:_R_B1 + 1, _L_B:_L_B + H1]           # [1, 32]
    b2 = p_ref[_R_B2:_R_B2 + 1, _L_B:_L_B + H1]           # [1, 32] (lane 16 == 1.0)

    dot = functools.partial(jnp.dot,
                            preferred_element_type=jnp.float32,
                            precision=jax.lax.Precision.HIGHEST)

    # feature_net: Linear(in,32) -> ReLU -> Linear(32,16) -> ReLU
    # (second layer runs zero-padded to 32 lanes; lane 16 becomes an exact 1.0).
    h1 = jnp.maximum(dot(x, w1) + b1, 0.0)                # [TB, 32]
    h2 = jnp.maximum(dot(h1, w2) + b2, 0.0)               # [TB, 32], h2[:,16] == 1.0

    # Fused heads: one MXU op; head biases ride on h2's constant-1 lane.
    heads = dot(h2, wh)                                   # [TB, 32], cols 3.. == 0

    # Per-column activation: col 0 -> tanh, col 1 -> sigmoid, col 2 -> identity.
    # Padded cols (heads==0) stay finite, so where's evaluate-both is benign.
    col = jax.lax.broadcasted_iota(jnp.int32, heads.shape, 1)
    act = jnp.where(col == 0, jnp.tanh(heads),
                    jnp.where(col == 1, jax.nn.sigmoid(heads), heads))

    out_ref[...] = act                                    # single lane-dense [TB, 32] store


def pack_params(params, input_dim):
    """Pack all weights/biases into one lane-dense fp32 slab of shape [rows, 128]."""
    rows = _slab_rows(input_dim)
    slab = jnp.zeros((rows, LANES), jnp.float32)

    # W1 at lanes 0:32.
    slab = slab.at[0:input_dim, _L_W1:_L_W1 + H1].set(params["w1"].astype(jnp.float32))
    # W2 at lanes 32:48 (output cols 16:32 stay zero -> padded h2 lanes are zero).
    slab = slab.at[0:H1, _L_W2:_L_W2 + H2].set(params["w2"].astype(jnp.float32))
    # Head weights at lanes 64/65/66, rows 0:16; head biases in row 16 (== h2's 1-lane).
    slab = slab.at[0:H2, _L_WH + 0].set(params["wp"][:, 0].astype(jnp.float32))
    slab = slab.at[0:H2, _L_WH + 1].set(params["wc"][:, 0].astype(jnp.float32))
    slab = slab.at[0:H2, _L_WH + 2].set(params["wr"][:, 0].astype(jnp.float32))
    slab = slab.at[_ONE_LANE, _L_WH + 0].set(params["bp"][0].astype(jnp.float32))
    slab = slab.at[_ONE_LANE, _L_WH + 1].set(params["bc"][0].astype(jnp.float32))
    slab = slab.at[_ONE_LANE, _L_WH + 2].set(params["br"][0].astype(jnp.float32))
    # b1 on 8-aligned row 0, lanes 96:128.
    slab = slab.at[_R_B1, _L_B:_L_B + H1].set(params["b1"].astype(jnp.float32))
    # b2 on 8-aligned row 8, lanes 96:112; lane 112 carries the exact 1.0 for h2[:,16].
    slab = slab.at[_R_B2, _L_B:_L_B + H2].set(params["b2"].astype(jnp.float32))
    slab = slab.at[_R_B2, _L_B + _ONE_LANE].set(jnp.float32(1.0))
    return slab                                           # [rows, 128]


@functools.lru_cache(maxsize=None)
def _build_call(batch_tile, input_dim, rows, grid_batches):
    """Build (and cache) the lowered pallas_call for a given problem shape."""
    kernel = functools.partial(_financial_kernel, input_dim=input_dim)
    flops = 2 * batch_tile * (input_dim * H1 + H1 * H1 + H1 * H1) * grid_batches
    transc = 2 * batch_tile * H1 * grid_batches
    bytes_acc = 4 * (grid_batches * batch_tile * (input_dim + H1) + rows * LANES)
    cost = pl.CostEstimate(flops=flops, transcendentals=transc, bytes_accessed=bytes_acc)

    if grid_batches == 1:
        vmem = pl.BlockSpec(memory_space=pltpu.MemorySpace.VMEM)
        return pl.pallas_call(
            kernel,
            out_shape=jax.ShapeDtypeStruct((batch_tile, H1), jnp.float32),
            in_specs=[vmem, vmem],
            out_specs=vmem,
            cost_estimate=cost,
        )

    # Large-B path: parallel batch grid (sharded across v7x's 2 TCs; no-op on v5e/v6e).
    return pl.pallas_call(
        kernel,
        out_shape=jax.ShapeDtypeStruct((grid_batches * batch_tile, H1), jnp.float32),
        grid=(grid_batches,),
        in_specs=[pl.BlockSpec((batch_tile, input_dim), lambda i: (i, 0)),
                  pl.BlockSpec((rows, LANES), lambda i: (0, 0))],
        out_specs=pl.BlockSpec((batch_tile, H1), lambda i: (i, 0)),
        cost_estimate=cost,
        compiler_params=pltpu.CompilerParams(
            dimension_semantics=("parallel",),
            vmem_limit_bytes=32 * 1024 * 1024,   # safe on v5e/v6e/v7x; blocks are tiny
        ),
    )


def _forward(x, packed_params, *, input_dim):
    """x: [B, input_dim] float32; packed_params from pack_params(). Returns dict of [B]."""
    batch = x.shape[0]
    rows = _slab_rows(input_dim)
    if batch > _LARGE_B_TILE and batch % _LARGE_B_TILE == 0:
        call = _build_call(_LARGE_B_TILE, input_dim, rows, batch // _LARGE_B_TILE)
    else:
        call = _build_call(batch, input_dim, rows, 1)
    out = call(x, packed_params)                          # [B, 32] lane-dense
    return {
        "positions": out[:, 0],
        "confidence": out[:, 1],
        "predicted_returns": out[:, 2],
    }


# jit'd entry point; input_dim static so shape-dependent Python runs at trace time only.
simple_financial_model = jax.jit(_forward, static_argnames=("input_dim",))


def init_params(key, input_dim=8):
    """Deterministic init matching nn.Linear default U(-1/sqrt(fan_in), +1/sqrt(fan_in)).

    Weights are stored as [in_features, out_features] (transpose of torch layout).
    """
    def linear(key, fan_in, fan_out):
        kw, kb = jax.random.split(key)
        bound = 1.0 / jnp.sqrt(float(fan_in))
        w = jax.random.uniform(kw, (fan_in, fan_out), jnp.float32, -bound, bound)
        b = jax.random.uniform(kb, (fan_out,), jnp.float32, -bound, bound)
        return w, b

    k1, k2, k3, k4, k5 = jax.random.split(key, 5)
    w1, b1 = linear(k1, input_dim, H1)
    w2, b2 = linear(k2, H1, H2)
    wp, bp = linear(k3, H2, 1)
    wc, bc = linear(k4, H2, 1)
    wr, br = linear(k5, H2, 1)
    return {
        "w1": w1, "b1": b1,
        "w2": w2, "b2": b2,
        "wp": wp, "bp": bp,
        "wc": wc, "bc": bc,
        "wr": wr, "br": br,
    }


def reference_forward(x, params):
    """Plain-JAX reference mirroring the PyTorch module."""
    h1 = jnp.maximum(x @ params["w1"] + params["b1"], 0.0)
    h2 = jnp.maximum(h1 @ params["w2"] + params["b2"], 0.0)
    pos = jnp.tanh(h2 @ params["wp"] + params["bp"])[:, 0]
    conf = jax.nn.sigmoid(h2 @ params["wc"] + params["bc"])[:, 0]
    ret = (h2 @ params["wr"] + params["br"])[:, 0]
    return {"positions": pos, "confidence": conf, "predicted_returns": ret}


if __name__ == "__main__":
    key = jax.random.PRNGKey(0)
    kx, kp, kx2 = jax.random.split(key, 3)

    B, input_dim = 8, 8
    x = jax.random.normal(kx, (B, input_dim), dtype=jnp.float32)
    params = init_params(kp, input_dim=input_dim)
    packed = pack_params(params, input_dim)

    # Small-B (grid-less) path — matches the original experiment's batch size.
    out = simple_financial_model(x, packed, input_dim=input_dim)
    out = jax.block_until_ready(out)
    ref = reference_forward(x, params)
    for k in ("positions", "confidence", "predicted_returns"):
        assert out[k].shape == (B,), (k, out[k].shape)
        assert jnp.allclose(out[k], ref[k], atol=1e-5, rtol=1e-5), k

    # Large-B (parallel batch-grid) path — validates the v7x / mem-bound variant.
    B2 = 1024
    x2 = jax.random.normal(kx2, (B2, input_dim), dtype=jnp.float32)
    out2 = jax.block_until_ready(simple_financial_model(x2, packed, input_dim=input_dim))
    ref2 = reference_forward(x2, params)
    for k in ("positions", "confidence", "predicted_returns"):
        assert out2[k].shape == (B2,), (k, out2[k].shape)
        assert jnp.allclose(out2[k], ref2[k], atol=1e-5, rtol=1e-5), k

    print("KERNEL_OK")
</pallas_src>

<mosaic_0001>
module attributes {stable_mosaic.version = 11 : i64} {
  func.func @_financial_kernel(%arg0: memref<8x8xf32, #tpu.memory_space<vmem>>, %arg1: memref<32x128xf32, #tpu.memory_space<vmem>>, %arg2: memref<8x32xf32, #tpu.memory_space<vmem>>) attributes {dimension_semantics = [], scalar_prefetch = 0 : i64, scratch_operands = 0 : i64, tpu.core_type = #tpu.core_type<tc>} {
    %c0 = arith.constant 0 : index
    %c0_0 = arith.constant 0 : index
    %0 = vector.load %arg0[%c0, %c0_0] : memref<8x8xf32, #tpu.memory_space<vmem>>, vector<8x8xf32>
    %c0_1 = arith.constant 0 : index
    %c0_2 = arith.constant 0 : index
    %1 = vector.load %arg1[%c0_1, %c0_2] : memref<32x128xf32, #tpu.memory_space<vmem>>, vector<8x32xf32>
    %c0_3 = arith.constant 0 : index
    %c32 = arith.constant 32 : index
    %2 = vector.load %arg1[%c0_3, %c32] : memref<32x128xf32, #tpu.memory_space<vmem>>, vector<32x32xf32>
    %c0_4 = arith.constant 0 : index
    %c64 = arith.constant 64 : index
    %3 = vector.load %arg1[%c0_4, %c64] : memref<32x128xf32, #tpu.memory_space<vmem>>, vector<32x32xf32>
    %c0_5 = arith.constant 0 : index
    %c96 = arith.constant 96 : index
    %4 = vector.load %arg1[%c0_5, %c96] : memref<32x128xf32, #tpu.memory_space<vmem>>, vector<1x32xf32>
    %c8 = arith.constant 8 : index
    %c96_6 = arith.constant 96 : index
    %5 = vector.load %arg1[%c8, %c96_6] : memref<32x128xf32, #tpu.memory_space<vmem>>, vector<1x32xf32>
    %cst = arith.constant dense<0.000000e+00> : vector<8x32xf32>
    %6 = tpu.matmul %0, %1, %cst {dimension_numbers = #tpu.dot_dimension_numbers<[1], [0], [0], [1], [0, 0, 1, 1], [], []>, precision = #tpu.contract_precision<fp32>} : vector<8x8xf32>, vector<8x32xf32>, vector<8x32xf32> -> vector<8x32xf32>
    %7 = vector.broadcast %4 : vector<1x32xf32> to vector<8x32xf32>
    %8 = arith.addf %6, %7 : vector<8x32xf32>
    %cst_7 = arith.constant 0.000000e+00 : f32
    %9 = vector.broadcast %cst_7 : f32 to vector<8x32xf32>
    %10 = arith.maximumf %8, %9 : vector<8x32xf32>
    %cst_8 = arith.constant dense<0.000000e+00> : vector<8x32xf32>
    %11 = tpu.matmul %10, %2, %cst_8 {dimension_numbers = #tpu.dot_dimension_numbers<[1], [0], [0], [1], [0, 0, 1, 1], [], []>, precision = #tpu.contract_precision<fp32>} : vector<8x32xf32>, vector<32x32xf32>, vector<8x32xf32> -> vector<8x32xf32>
    %12 = vector.broadcast %5 : vector<1x32xf32> to vector<8x32xf32>
    %13 = arith.addf %11, %12 : vector<8x32xf32>
    %cst_9 = arith.constant 0.000000e+00 : f32
    %14 = vector.broadcast %cst_9 : f32 to vector<8x32xf32>
    %15 = arith.maximumf %13, %14 : vector<8x32xf32>
    %cst_10 = arith.constant dense<0.000000e+00> : vector<8x32xf32>
    %16 = tpu.matmul %15, %3, %cst_10 {dimension_numbers = #tpu.dot_dimension_numbers<[1], [0], [0], [1], [0, 0, 1, 1], [], []>, precision = #tpu.contract_precision<fp32>} : vector<8x32xf32>, vector<32x32xf32>, vector<8x32xf32> -> vector<8x32xf32>
    %17 = tpu.iota {dimensions = array<i32: 1>} : vector<8x32xi32>
    %c0_i32 = arith.constant 0 : i32
    %18 = vector.broadcast %c0_i32 : i32 to vector<8x32xi32>
    %19 = arith.cmpi eq, %17, %18 : vector<8x32xi32>
    %20 = math.tanh %16 : vector<8x32xf32>
    %c1_i32 = arith.constant 1 : i32
    %21 = vector.broadcast %c1_i32 : i32 to vector<8x32xi32>
    %22 = arith.cmpi eq, %17, %21 : vector<8x32xi32>
    %23 = arith.negf %16 : vector<8x32xf32>
    %24 = math.exp %23 : vector<8x32xf32>
    %cst_11 = arith.constant 1.000000e+00 : f32
    %25 = vector.broadcast %cst_11 : f32 to vector<8x32xf32>
    %26 = arith.addf %25, %24 : vector<8x32xf32>
    %27 = arith.divf %25, %26 : vector<8x32xf32>
    %28 = arith.select %22, %27, %16 : vector<8x32xi1>, vector<8x32xf32>
    %29 = arith.select %19, %20, %28 : vector<8x32xi1>, vector<8x32xf32>
    %c0_12 = arith.constant 0 : index
    %c0_13 = arith.constant 0 : index
    %30 = vector.load %arg2[%c0_12, %c0_13] : memref<8x32xf32, #tpu.memory_space<vmem>>, vector<8x32xf32>
    tpu.vector_store %arg2[%c0_12, %c0_13], %29 {strides = array<i32>} : memref<8x32xf32, #tpu.memory_space<vmem>>, vector<8x32xf32>,
    return
  }
}

</mosaic_0001>

<bundles_post_ra>
// kernel: _forward.1
= control target key start
LH: loop header
LB: loop body
LE: loop exit
PB: predicated region body
PF: predicated region fallthrough
CT: control target
= control target key end

     0   :  { %7 = vsyncpa [#allocation3], 0  ;;  %s761_s0 = inlined_call_operand.hbm [shape: f32[8,8], index: 0, kind: input, shape index: {}]   ;;  %s762_s1 = inlined_call_operand.hbm [shape: f32[32,128], index: 1, kind: input, shape index: {}]   ;;  %s763_s2 = inlined_call_operand.vmem [shape: f32[8,32], index: 2, kind: output, shape index: {}]  }
   0x1   :  { %s14_s11 = sshll.u32 %s761_s0, 4  ;;  %s15_s11 = int_to_ptr.hbm [resolvable:$true] %s14_s11 }
   0x2   :  { %8 = vsyncpa [#allocation5], 0  ;;  %s717_s12 = smov [#allocation2]   ;;  %s24_s16 = sshll.u32 %s762_s1, 4  ;;  %s25_s16 = int_to_ptr.hbm [resolvable:$true] %s24_s16 }
   0x3   :  { %s16_s13 = sshll.u32 %s717_s12, 4  ;;  %s718_s17 = smov [#allocation4]   ;;  %s17_s13 = int_to_ptr.vmem [resolvable:$true] %s16_s13 }
   0x4   :  { %19 = dma.hbm_to_vmem [thread:$0]  %s15_s11, 128, %s17_s13, [#allocation3]  }
   0x5   :  { %s26_s18 = sshll.u32 %s718_s17, 4  ;;  %s719_s19 = smov 128   ;;  %s27_s18 = int_to_ptr.vmem [resolvable:$true] %s26_s18 }
   0x6   :  { %s720_s20 = smov 8  }
   0x7   :  { %32 = dma.hbm_to_vmem [thread:$0]  %s25_s16, 512, %s27_s18, [#allocation5], %s719_s19, %s719_s19, %s720_s20  }
   0x8   :  { %713 = dma.done.wait [#allocation3], 128  }
   0x9   :  { %714 = vsyncadd [#allocation3], 4294967168 }
   0xa   :  { %715 = dma.done.wait [#allocation5], 512  }
   0xb   :  { %716 = vsyncadd [#allocation5], 4294966784  ;;  %vm54_vm0 = vcmask 64512   ;;  %v657_v0 = vld [vmem:[#allocation4] ss:$0 sm:$0xff]  ;;  %v45_v1 = vld [vmem:[#allocation4 + $0x10] sm:$0xff] }
   0xc   :  { %s721_s0 = smov 96   ;;  %v42_v2 = vld [vmem:[#allocation4] sm:$0xff]  ;;  %v41_v3 = vld [vmem:[#allocation2] sm:$0xff]  ;;  %s722_s1 = smov 32   ;;  %v746_v10 = vld [vmem:[#allocation4 + $0x8] sm:$0xff]  ;;  %vm226_vm1 = vcmask 261120  }
   0xd   :  { %214 = vrot.lane.b32.xlu1 %v45_v1, %s721_s0  ;;  %51 = vrot.lane.b32.xlu0 %v657_v0, %s722_s1  ;;  %v73_v4 = vand.u32 4294901760, %v42_v2  ;;  %v56_v5 = vsel %vm54_vm0, %v41_v3, 0  ;;  %v46_v11 = vld [vmem:[#allocation4 + $0x18] sm:$0xff]  ;;  %s723_s21 = smov 64   ;;  %v658_v46 = vld [vmem:[#allocation4 + $0x8] ss:$0 sm:$0xff] }
   0xe   :  { %210 = vrot.lane.b32.xlu2 %v42_v2, %s721_s0  ;;  %v75_v6 = vand.u32 4294901760, %v56_v5 }
   0xf   :  { %v100_v7 = vsub.f32 %v42_v2, %v73_v4  ;;  %74 = vmatpush.msra.mxu0 %v73_v4  ;;  %150 = vmatpush.msra.mxu3 %v73_v4 }
  0x10   :  { %v76_v8 = vsub.f32 %v56_v5, %v75_v6 }
  0x11   :  { %127 = vmatpush.msra.mxu2 %v100_v7  ;;  %v101_v9 = vand.u32 4294901760, %v100_v7 }
  0x12   :  { %130 = vmatmul.f32.vlgmr.msra.gmra.mxu2 %v76_v8  ;;  %v77_v12 = vand.u32 4294901760, %v76_v8 }
  0x13   :  { %176 = vmatpush.msrb.mxu0 %v101_v9  ;;  %v102_v13 = vsub.f32 %v100_v7, %v101_v9 }
  0x14   :  { %v78_v14 = vsub.f32 %v76_v8, %v77_v12  ;;  %154 = vmatmul.f32.vlgmr.msra.gmra.mxu3 %v77_v12 }
  0x15   :  { %212 = vrot.lane.b32.xlu1 %v746_v10, %s721_s0  ;;  %216 = vrot.lane.b32.xlu0 %v46_v11, %s721_s0  ;;  %v103_v15 = vand.u32 4294901760, %v102_v13 }
  0x16   :  { %v79_v16 = vand.u32 4294901760, %v78_v14  ;;  %223 = vrot.lane.b32.xlu2 %v658_v46, %s722_s1 }
  0x17   :  { %104 = vmatpush.msra.mxu1 %v103_v15 }
  0x18   :  { %80 = vmatmul.f32.vlgmr.msra.gmra.mxu0 %v79_v16  ;;  %106 = vmatmul.f32.vlgmr.msra.gmra.mxu1 %v75_v6 }
  0x19   :  { %198 = vmatpush.msrb.mxu1 %v73_v4 }
  0x1d   :  { %422 = vrot.lane.b32.xlu0 %v46_v11, %s723_s21  ;;  %420 = vrot.lane.b32.xlu1 %v45_v1, %s723_s21 }
  0x1e   :  { %418 = vrot.lane.b32.xlu2 %v746_v10, %s723_s21 }
  0x20   :  { %178 = vmatmul.f32.vlgmr.msrb.gmra.mxu0 %v75_v6  ;;  %200 = vmatmul.f32.vlgmr.msrb.gmra.mxu1 %v75_v6 }
  0x25   :  { %416 = vrot.lane.b32.xlu0 %v42_v2, %s723_s21 }
  0x68   :  { %v211_v20 = vpop.permute.xlu2 %210 }
  0x69   :  { %v248_v22 = vand.u32 4294901760, %v211_v20 }
  0x6b   :  { %v290_v27 = vsub.f32 %v211_v20, %v248_v22 }
  0x6d   :  { %v291_v34 = vand.u32 4294901760, %v290_v27 }
  0x6f   :  { %v292_v39 = vsub.f32 %v290_v27, %v291_v34 }
  0x70   :  { %v224_v62 = vpop.permute.xlu2 %223 }
  0x71   :  { %v293_v41 = vand.u32 4294901760, %v292_v39 }
  0x78   :  { %v419_v3 = vpop.permute.xlu2 %418 }
  0x79   :  { %v447_v6 = vand.u32 4294901760, %v419_v3 }
  0x7b   :  { %v485_v9 = vsub.f32 %v419_v3, %v447_v6 }
  0x7d   :  { %v486_v14 = vand.u32 4294901760, %v485_v9 }
  0x7f   :  { %v215_v17 = vpop.permute.xlu1 %214  ;;  %v52_v18 = vpop.permute.xlu0 %51 }
  0x80   :  { %v244_v19 = vand.u32 4294901760, %v215_v17 }
  0x82   :  { %v278_v21 = vsub.f32 %v215_v17, %v244_v19 }
  0x84   :  { %v279_v28 = vand.u32 4294901760, %v278_v21 }
  0x86   :  { %v280_v33 = vsub.f32 %v278_v21, %v279_v28 }
  0x87   :  { %v213_v23 = vpop.permute.xlu1 %212  ;;  %v217_v24 = vpop.permute.xlu0 %216 }
  0x88   :  { %v246_v25 = vand.u32 4294901760, %v213_v23  ;;  %v242_v26 = vand.u32 4294901760, %v217_v24  ;;  %v281_v38 = vand.u32 4294901760, %v280_v33 }
  0x8a   :  { %v284_v29 = vsub.f32 %v213_v23, %v246_v25  ;;  %v272_v30 = vsub.f32 %v217_v24, %v242_v26  ;;  %243 = vmatpush.msrb.mxu2 %v242_v26  ;;  %343 = vmatpush.msra.mxu1 %v242_v26 }
  0x8c   :  { %v285_v31 = vand.u32 4294901760, %v284_v29  ;;  %v273_v32 = vand.u32 4294901760, %v272_v30  ;;  %245 = vmatpush.msrb.mxu2 %v244_v19  ;;  %314 = vmatpush.msra.mxu0 %v272_v30 }
  0x8d   :  { %345 = vmatpush.msra.mxu1 %v244_v19 }
  0x8e   :  { %v274_v35 = vsub.f32 %v272_v30, %v273_v32  ;;  %v286_v36 = vsub.f32 %v284_v29, %v285_v31  ;;  %247 = vmatpush.msrb.mxu2 %v246_v25  ;;  %317 = vmatpush.msra.mxu0 %v278_v21 }
  0x8f   :  { %347 = vmatpush.msra.mxu1 %v246_v25  ;;  %v423_v63 = vpop.permute.xlu0 %422  ;;  %v421_v2 = vpop.permute.xlu1 %420 }
  0x90   :  { %v275_v37 = vand.u32 4294901760, %v274_v35  ;;  %249 = vmatpush.msrb.mxu2 %v248_v22  ;;  %320 = vmatpush.msra.mxu0 %v284_v29  ;;  %v287_v40 = vand.u32 4294901760, %v286_v36  ;;  %v443_v0 = vand.u32 4294901760, %v423_v63  ;;  %v445_v5 = vand.u32 4294901760, %v421_v2 }
  0x91   :  { %349 = vmatpush.msra.mxu1 %v248_v22 }
  0x92   :  { %372 = vmatpush.msra.mxu2 %v273_v32  ;;  %276 = vmatpush.msrb.mxu3 %v275_v37  ;;  %v473_v1 = vsub.f32 %v423_v63, %v443_v0  ;;  %v479_v8 = vsub.f32 %v421_v2, %v445_v5 }
  0x93   :  { %323 = vmatpush.msra.mxu0 %v290_v27 }
  0x94   :  { %376 = vmatpush.msra.mxu2 %v279_v28  ;;  %282 = vmatpush.msrb.mxu3 %v281_v38  ;;  %v474_v4 = vand.u32 4294901760, %v473_v1  ;;  %v480_v13 = vand.u32 4294901760, %v479_v8 }
  0x95   :  { %v81_v42 = vpop.f32.mrf.mxu0  ;;  %v107_v43 = vpop.f32.mrf.mxu1  ;;  %444 = vmatpush.msrb.mxu0 %v443_v0 }
  0x96   :  { %380 = vmatpush.msra.mxu2 %v285_v31  ;;  %v82_v44 = vadd.f32 %v81_v42, %v52_v18  ;;  %288 = vmatpush.msrb.mxu3 %v287_v40  ;;  %v131_v45 = vpop.f32.mrf.mxu2  ;;  %v475_v7 = vsub.f32 %v473_v1, %v474_v4  ;;  %v481_v17 = vsub.f32 %v479_v8, %v480_v13 }
  0x97   :  { %v155_v48 = vpop.f32.mrf.mxu3  ;;  %446 = vmatpush.msrb.mxu0 %v445_v5  ;;  %v417_v10 = vpop.permute.xlu0 %416  ;;  %v487_v18 = vsub.f32 %v485_v9, %v486_v14 }
  0x98   :  { %384 = vmatpush.msra.mxu2 %v291_v34  ;;  %v108_v47 = vadd.f32 %v107_v43, %v82_v44  ;;  %294 = vmatpush.msrb.mxu3 %v293_v41  ;;  %v476_v11 = vand.u32 4294901760, %v475_v7  ;;  %v449_v12 = vand.u32 4294901760, %v417_v10 }
  0x99   :  { %448 = vmatpush.msrb.mxu0 %v447_v6  ;;  %v488_v20 = vand.u32 4294901760, %v487_v18 }
  0x9a   :  { %403 = vmatpush.msra.mxu3 %v242_v26  ;;  %v132_v49 = vadd.f32 %v131_v45, %v108_v47  ;;  %v491_v15 = vsub.f32 %v417_v10, %v449_v12  ;;  %477 = vmatpush.msrb.mxu1 %v476_v11 }
  0x9b   :  { %450 = vmatpush.msrb.mxu0 %v449_v12 }
  0x9c   :  { %405 = vmatpush.msra.mxu3 %v244_v19  ;;  %v156_v50 = vadd.f32 %v155_v48, %v132_v49  ;;  %v492_v16 = vand.u32 4294901760, %v491_v15  ;;  %v482_v19 = vand.u32 4294901760, %v481_v17 }
  0x9d   :  { %v179_v51 = vpop.f32.mrf.mxu0  ;;  %v201_v52 = vpop.f32.mrf.mxu1 }
  0x9e   :  { %407 = vmatpush.msra.mxu3 %v246_v25  ;;  %v180_v53 = vadd.f32 %v179_v51, %v156_v50  ;;  %483 = vmatpush.msrb.mxu1 %v482_v19  ;;  %v493_v21 = vsub.f32 %v491_v15, %v492_v16 }
  0xa0   :  { %409 = vmatpush.msra.mxu3 %v248_v22  ;;  %v202_v54 = vadd.f32 %v201_v52, %v180_v53  ;;  %489 = vmatpush.msrb.mxu1 %v488_v20  ;;  %v494_v22 = vand.u32 4294901760, %v493_v21 }
  0xa2   :  { %v204_v55 = vmax.f32 %v202_v54, 0.0  ;;  %495 = vmatpush.msrb.mxu1 %v494_v22 }
  0xa4   :  { %v228_v56 = vsel %vm226_vm1, %v204_v55, 0 }
  0xa5   :  { %v250_v57 = vand.u32 4294901760, %v228_v56 }
  0xa7   :  { %v251_v58 = vsub.f32 %v228_v56, %v250_v57  ;;  %296 = vmatmul.f32.vlgmr.msrb.gmra.mxu3 %v250_v57 }
  0xa8   :  { %544 = vmatpush.msrb.mxu3 %v443_v0 }
  0xa9   :  { %326 = vmatmul.f32.vlgmr.msra.gmra.mxu0 %v251_v58  ;;  %v252_v59 = vand.u32 4294901760, %v251_v58 }
  0xaa   :  { %546 = vmatpush.msrb.mxu3 %v445_v5  ;;  %573 = vmatpush.msra.mxu0 %v474_v4 }
  0xab   :  { %353 = vmatmul.f32.vlgmr.msra.gmra.mxu1 %v252_v59  ;;  %v253_v60 = vsub.f32 %v251_v58, %v252_v59 }
  0xac   :  { %548 = vmatpush.msrb.mxu3 %v447_v6  ;;  %577 = vmatpush.msra.mxu0 %v480_v13 }
  0xad   :  { %v254_v61 = vand.u32 4294901760, %v253_v60  ;;  %604 = vmatpush.msra.mxu1 %v443_v0 }
  0xae   :  { %550 = vmatpush.msrb.mxu3 %v449_v12  ;;  %581 = vmatpush.msra.mxu0 %v486_v14 }
  0xaf   :  { %255 = vmatmul.f32.vlgmr.msrb.gmra.mxu2 %v254_v61  ;;  %411 = vmatmul.f32.vlgmr.msra.gmra.mxu3 %v250_v57 }
  0xb0   :  { %515 = vmatpush.msrb.mxu2 %v473_v1  ;;  %585 = vmatpush.msra.mxu0 %v492_v16 }
  0xb1   :  { %606 = vmatpush.msra.mxu1 %v445_v5 }
  0xb2   :  { %518 = vmatpush.msrb.mxu2 %v479_v8 }
  0xb3   :  { %608 = vmatpush.msra.mxu1 %v447_v6 }
  0xb4   :  { %521 = vmatpush.msrb.mxu2 %v485_v9 }
  0xb5   :  { %610 = vmatpush.msra.mxu1 %v449_v12 }
  0xb6   :  { %524 = vmatpush.msrb.mxu2 %v491_v15 }
  0xb7   :  { %386 = vmatmul.f32.vlgmr.msra.gmra.mxu2 %v250_v57  ;;  %v616_v57 = vlaneseq }
  0xb9   :  { %v617_v60 = vand.u32 127, %v616_v57 }
  0xbb   :  { %vm620_vm4 = vcmp.eq.s32.totalorder %v617_v60, 1  ;;  %vm618_vm6 = vcmp.eq.s32.totalorder %v617_v60, 0 }
 0x126   :  { %v327_v27 = vpop.f32.mrf.mxu0 }
 0x128   :  { %v354_v29 = vpop.f32.mrf.mxu1 }
 0x12a   :  { %v297_v23 = vpop.f32.mrf.mxu3 }
 0x132   :  { %v256_v24 = vpop.f32.mrf.mxu2  ;;  %v412_v33 = vpop.f32.mrf.mxu3 }
 0x133   :  { %v257_v25 = vadd.f32 %v256_v24, %v224_v62 }
 0x135   :  { %v298_v26 = vadd.f32 %v297_v23, %v257_v25 }
 0x137   :  { %v328_v28 = vadd.f32 %v327_v27, %v298_v26 }
 0x139   :  { %v355_v30 = vadd.f32 %v354_v29, %v328_v28 }
 0x13a   :  { %v387_v31 = vpop.f32.mrf.mxu2 }
 0x13b   :  { %v388_v32 = vadd.f32 %v387_v31, %v355_v30 }
 0x13d   :  { %v413_v34 = vadd.f32 %v412_v33, %v388_v32 }
 0x13f   :  { %v415_v35 = vmax.f32 %v413_v34, 0.0 }
 0x141   :  { %v429_v36 = vsel %vm226_vm1, %v415_v35, 0 }
 0x142   :  { %v451_v37 = vand.u32 4294901760, %v429_v36 }
 0x144   :  { %v452_v38 = vsub.f32 %v429_v36, %v451_v37  ;;  %497 = vmatmul.f32.vlgmr.msrb.gmra.mxu1 %v451_v37 }
 0x146   :  { %527 = vmatmul.f32.vlgmr.msrb.gmra.mxu2 %v452_v38  ;;  %v453_v39 = vand.u32 4294901760, %v452_v38 }
 0x148   :  { %554 = vmatmul.f32.vlgmr.msrb.gmra.mxu3 %v453_v39  ;;  %v454_v40 = vsub.f32 %v452_v38, %v453_v39 }
 0x14a   :  { %v455_v41 = vand.u32 4294901760, %v454_v40 }
 0x14c   :  { %456 = vmatmul.f32.vlgmr.msrb.gmra.mxu0 %v455_v41  ;;  %612 = vmatmul.f32.vlgmr.msra.gmra.mxu1 %v451_v37 }
 0x154   :  { %587 = vmatmul.f32.vlgmr.msra.gmra.mxu0 %v451_v37 }
 0x1c1   :  { %v498_v42 = vpop.f32.mrf.mxu1 }
 0x1c9   :  { %v457_v43 = vpop.f32.mrf.mxu0  ;;  %v528_v45 = vpop.f32.mrf.mxu2 }
 0x1ca   :  { %v499_v44 = vadd.f32 %v498_v42, %v457_v43  ;;  %v613_v51 = vpop.f32.mrf.mxu1 }
 0x1cb   :  { %v555_v47 = vpop.f32.mrf.mxu3 }
 0x1cc   :  { %v529_v46 = vadd.f32 %v528_v45, %v499_v44 }
 0x1ce   :  { %v556_v48 = vadd.f32 %v555_v47, %v529_v46 }
 0x1d1   :  { %v588_v49 = vpop.f32.mrf.mxu0 }
 0x1d2   :  { %v589_v50 = vadd.f32 %v588_v49, %v556_v48 }
 0x1d4   :  { %v614_v52 = vadd.f32 %v613_v51, %v589_v50 }
 0x1d6   :  { %v649_v53 = vmul.f32 -1.442695, %v614_v52 }
 0x1d8   :  { %659 = vpow2.f32 %v649_v53 }
 0x1de   :  { %v660_v54 = vpop.eup %659 }
 0x1df   :  { %v624_v55 = vadd.f32 1.0, %v660_v54 }
 0x1e1   :  { %661 = vrcp.f32 %v624_v55  ;;  %v636_v61 = vand.u32 2147483648, %v624_v55  ;;  %v634_v63 = vand.u32 2147483647, %v624_v55  ;;  %vm630_vm3 = vweird.f32 %v624_v55 }
 0x1e2   :  { %663 = vtanh.f32 %v614_v52 }
 0x1e3   :  { %v637_v1 = vor.u32 1.1754944e-38, %v636_v61  ;;  %vm635_vm7 = vcmp.eq.f32.partialorder %v634_v63, 8.507059e+37 }
 0x1e7   :  { %v662_v56 = vpop.eup %661 }
 0x1e8   :  { %v626_v58 = vmul.f32 %v662_v56, %v624_v55  ;;  %vm631_vm2 = vweird.f32 %v662_v56  ;;  %v664_v4 = vpop.eup %663 }
 0x1e9   :  { %vm632_vm5 = vmor %vm630_vm3, %vm631_vm2 }
 0x1ea   :  { %v627_v59 = vsub.f32 1.0, %v626_v58 }
 0x1ec   :  { %v628_v62 = vmul.f32 %v662_v56, %v627_v59 }
 0x1ee   :  { %v629_v0 = vadd.f32 %v662_v56, %v628_v62 }
 0x1f0   :  { %v633_v2 = vsel %vm632_vm5, %v662_v56, %v629_v0 }
 0x1f1   :  { %v638_v3 = vsel %vm635_vm7, %v637_v1, %v633_v2 }
 0x1f2   :  { %v640_v5 = vsel %vm620_vm4, %v638_v3, %v614_v52 }
 0x1f3   :  { %v641_v6 = vsel %vm618_vm6, %v664_v4, %v640_v5 }
 0x1f4   :  { %642 = vst.msk [vmem:[%s763_s2] sm:$0xff] %vm226_vm1, %v641_v6 }
 0x1f5   :  { %647 = vsyncpa [#allocation3], 1 }
 0x1f6   :  { %648 = vsyncpa [#allocation5], 1 }

</bundles_post_ra>
